<compile_context>
chip_gen: v7x
topology: tpu7x:2x2x1
jax: 0.10.0
libtpu: 0.0.40
codegen_flags: <defaults>
</compile_context>

<pallas_src>
import jax
import jax.numpy as jnp
from jax.experimental import pallas as pl
from jax.experimental.pallas import tpu as pltpu


def _round_up(n, m):
    return ((n + m - 1) // m) * m


def fcnet_kernel(xT_ref, w1_ref, b1_ref, w2_ref, b2_ref, w3_ref, b3_ref, oT_ref):
    # xT_ref: (5, TB); wN: (out, in); bN: (out, 1); oT_ref: (4, TB).
    xT = xT_ref[...]
    h1 = jnp.dot(w1_ref[...], xT, preferred_element_type=jnp.float32) + b1_ref[...]
    h1 = jnp.maximum(h1, 0.0)
    h2 = jnp.dot(w2_ref[...], h1, preferred_element_type=jnp.float32) + b2_ref[...]
    h2 = jnp.maximum(h2, 0.0)
    h3 = jnp.dot(w3_ref[...], h2, preferred_element_type=jnp.float32) + b3_ref[...]
    oT_ref[...] = h3.astype(oT_ref.dtype)


def _fcnet_pallas(xT, params, tb):
    """xT: (5, B_pad) with B_pad % tb == 0 and tb % 128 == 0.  Returns (4, B_pad)."""
    f_in, b_pad = xT.shape
    assert tb % 128 == 0 and b_pad % tb == 0, (tb, b_pad)
    w1, b1, w2, b2, w3, b3 = (
        params["w1"], params["b1"], params["w2"],
        params["b2"], params["w3"], params["b3"],
    )
    out_dim = w3.shape[0]

    const2d = lambda a: pl.BlockSpec(a.shape, lambda i: (0, 0))  # VMEM-resident params

    return pl.pallas_call(
        fcnet_kernel,
        out_shape=jax.ShapeDtypeStruct((out_dim, b_pad), jnp.float32),
        grid=(b_pad // tb,),
        in_specs=[
            pl.BlockSpec((f_in, tb), lambda i: (0, i)),   # x^T streamed over batch
            const2d(w1), const2d(b1),
            const2d(w2), const2d(b2),
            const2d(w3), const2d(b3),
        ],
        out_specs=pl.BlockSpec((out_dim, tb), lambda i: (0, i)),
        compiler_params=pltpu.CompilerParams(
            dimension_semantics=("parallel",),            # megacore sharding on v7x
            vmem_limit_bytes=32 * 1024 * 1024,            # headroom for tb=32K on v5e
            # Let XLA fuse the x^T transpose/pad producer into operand 0 so it
            # does not become a separate HBM round trip.
            allow_input_fusion=[True, False, False, False, False, False, False],
        ),
    )(xT, w1, b1, w2, b2, w3, b3)


def fcnet_forward_featmajor(xT, params, *, block_b=32768):
    """Zero-copy path: xT is (5, B_pad) float32 with B_pad % 128 == 0 (batch on
    the lane axis).  Returns out^T of shape (4, B_pad)."""
    _, b_pad = xT.shape
    tb = _round_up(min(block_b, b_pad), 128)
    # Largest 128-multiple <= tb that divides b_pad (trace-time Python loop).
    while b_pad % tb != 0:
        tb -= 128
    return _fcnet_pallas(xT, params, tb)


def fcnet_forward(x, params, *, block_b=32768):
    """PyTorch-compatible API: x is (B, 5) float32, returns (B, 4).
    params are PyTorch-layout weights (out, in) and biases (out, 1)."""
    B, f_in = x.shape
    # Batch tile: multiple of 128 (lane-dense / unmasked stores), clamped for
    # tiny batches, then batch padded to a multiple of the tile.
    tb = _round_up(min(block_b, _round_up(max(B, 1), 128)), 128)
    b_pad = _round_up(B, tb)

    # Single feature-major, lane-dense input slab (zero-pad extra batch cols).
    xT = jnp.zeros((f_in, b_pad), x.dtype).at[:, :B].set(x.T)
    oT = _fcnet_pallas(xT, params, tb)

    # Back to PyTorch layout (B, 4); strip batch padding.
    return oT[:, :B].T


def init_params(key):
    """PyTorch Linear default init: U(-1/sqrt(fan_in), 1/sqrt(fan_in)).
    Weights stored PyTorch-style (out_features, in_features); biases (out_features, 1)."""
    dims = [(5, 10), (10, 12), (12, 4)]
    params = {}
    keys = jax.random.split(key, 2 * len(dims))
    for i, (fan_in, fan_out) in enumerate(dims):
        bound = 1.0 / jnp.sqrt(float(fan_in))
        params[f"w{i + 1}"] = jax.random.uniform(
            keys[2 * i], (fan_out, fan_in), jnp.float32, -bound, bound
        )
        params[f"b{i + 1}"] = jax.random.uniform(
            keys[2 * i + 1], (fan_out, 1), jnp.float32, -bound, bound
        )
    return params


def fcnet_reference(x, params):
    h = jnp.maximum(params["w1"] @ x.T + params["b1"], 0.0)
    h = jnp.maximum(params["w2"] @ h + params["b2"], 0.0)
    return (params["w3"] @ h + params["b3"]).T


if __name__ == "__main__":
    key = jax.random.PRNGKey(0)
    pkey, xkey1, xkey2, xkey3 = jax.random.split(key, 4)
    params = init_params(pkey)

    # 1) Small primary test (the module's natural input shape).
    x_small = jax.random.normal(xkey1, (8, 5), dtype=jnp.float32)
    out_small = jax.block_until_ready(fcnet_forward(x_small, params))
    ref_small = fcnet_reference(x_small, params)
    assert out_small.shape == (8, 4), out_small.shape
    assert jnp.allclose(out_small, ref_small, atol=1e-5, rtol=1e-5), "mismatch (small)"

    # 2) Non-multiple-of-128 batch with a small, non-128-aligned block_b to
    #    exercise padding, tile rounding, and a grid > 1 pipeline.
    x_big = jax.random.normal(xkey2, (333, 5), dtype=jnp.float32)
    out_big = jax.block_until_ready(fcnet_forward(x_big, params, block_b=200))
    ref_big = fcnet_reference(x_big, params)
    assert out_big.shape == (333, 4), out_big.shape
    assert jnp.allclose(out_big, ref_big, atol=1e-5, rtol=1e-5), "mismatch (tiled)"

    # 3) Zero-copy feature-major path (no wrapper transposes), grid > 1.
    xT = jax.random.normal(xkey3, (5, 256), dtype=jnp.float32)
    oT = jax.block_until_ready(fcnet_forward_featmajor(xT, params, block_b=128))
    ref_fm = fcnet_reference(xT.T, params).T
    assert oT.shape == (4, 256), oT.shape
    assert jnp.allclose(oT, ref_fm, atol=1e-5, rtol=1e-5), "mismatch (feat-major)"

    print("KERNEL_OK")
</pallas_src>

<mosaic_0001>
module attributes {stable_mosaic.version = 11 : i64} {
  func.func @fcnet_kernel(%arg0: i32, %arg1: memref<5x128xf32, #tpu.memory_space<vmem>>, %arg2: memref<10x5xf32, #tpu.memory_space<vmem>>, %arg3: memref<10x1xf32, #tpu.memory_space<vmem>>, %arg4: memref<12x10xf32, #tpu.memory_space<vmem>>, %arg5: memref<12x1xf32, #tpu.memory_space<vmem>>, %arg6: memref<4x12xf32, #tpu.memory_space<vmem>>, %arg7: memref<4x1xf32, #tpu.memory_space<vmem>>, %arg8: memref<4x128xf32, #tpu.memory_space<vmem>>) attributes {dimension_semantics = [#tpu.dimension_semantics<parallel>], iteration_bounds = array<i64: 1>, scalar_prefetch = 0 : i64, scratch_operands = 0 : i64, tpu.core_type = #tpu.core_type<tc>, window_params = [{transform_indices = @transform_0, window_bounds = array<i64: 5, 128>}, {pipeline_mode = #tpu.pipeline_mode<synchronous>, transform_indices = @transform_1, window_bounds = array<i64: 10, 5>}, {pipeline_mode = #tpu.pipeline_mode<synchronous>, transform_indices = @transform_2, window_bounds = array<i64: 10, 1>}, {pipeline_mode = #tpu.pipeline_mode<synchronous>, transform_indices = @transform_3, window_bounds = array<i64: 12, 10>}, {pipeline_mode = #tpu.pipeline_mode<synchronous>, transform_indices = @transform_4, window_bounds = array<i64: 12, 1>}, {pipeline_mode = #tpu.pipeline_mode<synchronous>, transform_indices = @transform_5, window_bounds = array<i64: 4, 12>}, {pipeline_mode = #tpu.pipeline_mode<synchronous>, transform_indices = @transform_6, window_bounds = array<i64: 4, 1>}, {transform_indices = @transform_7, window_bounds = array<i64: 4, 128>}]} {
    %c0 = arith.constant 0 : index
    %c0_0 = arith.constant 0 : index
    %0 = vector.load %arg1[%c0, %c0_0] : memref<5x128xf32, #tpu.memory_space<vmem>>, vector<5x128xf32>
    %c0_1 = arith.constant 0 : index
    %c0_2 = arith.constant 0 : index
    %1 = vector.load %arg2[%c0_1, %c0_2] : memref<10x5xf32, #tpu.memory_space<vmem>>, vector<10x5xf32>
    %cst = arith.constant dense<0.000000e+00> : vector<10x128xf32>
    %2 = tpu.matmul %1, %0, %cst {dimension_numbers = #tpu.dot_dimension_numbers<[1], [0], [0], [1], [0, 0, 1, 1], [], []>} : vector<10x5xf32>, vector<5x128xf32>, vector<10x128xf32> -> vector<10x128xf32>
    %c0_3 = arith.constant 0 : index
    %c0_4 = arith.constant 0 : index
    %3 = vector.load %arg3[%c0_3, %c0_4] : memref<10x1xf32, #tpu.memory_space<vmem>>, vector<10x1xf32>
    %4 = vector.broadcast %3 : vector<10x1xf32> to vector<10x128xf32>
    %5 = arith.addf %2, %4 : vector<10x128xf32>
    %cst_5 = arith.constant 0.000000e+00 : f32
    %6 = vector.broadcast %cst_5 : f32 to vector<10x128xf32>
    %7 = arith.maximumf %5, %6 : vector<10x128xf32>
    %c0_6 = arith.constant 0 : index
    %c0_7 = arith.constant 0 : index
    %8 = vector.load %arg4[%c0_6, %c0_7] : memref<12x10xf32, #tpu.memory_space<vmem>>, vector<12x10xf32>
    %cst_8 = arith.constant dense<0.000000e+00> : vector<12x128xf32>
    %9 = tpu.matmul %8, %7, %cst_8 {dimension_numbers = #tpu.dot_dimension_numbers<[1], [0], [0], [1], [0, 0, 1, 1], [], []>} : vector<12x10xf32>, vector<10x128xf32>, vector<12x128xf32> -> vector<12x128xf32>
    %c0_9 = arith.constant 0 : index
    %c0_10 = arith.constant 0 : index
    %10 = vector.load %arg5[%c0_9, %c0_10] : memref<12x1xf32, #tpu.memory_space<vmem>>, vector<12x1xf32>
    %11 = vector.broadcast %10 : vector<12x1xf32> to vector<12x128xf32>
    %12 = arith.addf %9, %11 : vector<12x128xf32>
    %cst_11 = arith.constant 0.000000e+00 : f32
    %13 = vector.broadcast %cst_11 : f32 to vector<12x128xf32>
    %14 = arith.maximumf %12, %13 : vector<12x128xf32>
    %c0_12 = arith.constant 0 : index
    %c0_13 = arith.constant 0 : index
    %15 = vector.load %arg6[%c0_12, %c0_13] : memref<4x12xf32, #tpu.memory_space<vmem>>, vector<4x12xf32>
    %cst_14 = arith.constant dense<0.000000e+00> : vector<4x128xf32>
    %16 = tpu.matmul %15, %14, %cst_14 {dimension_numbers = #tpu.dot_dimension_numbers<[1], [0], [0], [1], [0, 0, 1, 1], [], []>} : vector<4x12xf32>, vector<12x128xf32>, vector<4x128xf32> -> vector<4x128xf32>
    %c0_15 = arith.constant 0 : index
    %c0_16 = arith.constant 0 : index
    %17 = vector.load %arg7[%c0_15, %c0_16] : memref<4x1xf32, #tpu.memory_space<vmem>>, vector<4x1xf32>
    %18 = vector.broadcast %17 : vector<4x1xf32> to vector<4x128xf32>
    %19 = arith.addf %16, %18 : vector<4x128xf32>
    %c0_17 = arith.constant 0 : index
    %c0_18 = arith.constant 0 : index
    %20 = vector.load %arg8[%c0_17, %c0_18] : memref<4x128xf32, #tpu.memory_space<vmem>>, vector<4x128xf32>
    tpu.vector_store %arg8[%c0_17, %c0_18], %19 {strides = array<i32>} : memref<4x128xf32, #tpu.memory_space<vmem>>, vector<4x128xf32>,
    return
  }
  func.func @transform_0(%arg0: i32) -> (i32, i32) {
    %c0_i32 = arith.constant 0 : i32
    %c0_i32_0 = arith.constant 0 : i32
    return %c0_i32, %arg0 : i32, i32
  }
  func.func @transform_1(%arg0: i32) -> (i32, i32) {
    %c0_i32 = arith.constant 0 : i32
    %c0_i32_0 = arith.constant 0 : i32
    %c0_i32_1 = arith.constant 0 : i32
    return %c0_i32, %c0_i32_0 : i32, i32
  }
  func.func @transform_2(%arg0: i32) -> (i32, i32) {
    %c0_i32 = arith.constant 0 : i32
    %c0_i32_0 = arith.constant 0 : i32
    %c0_i32_1 = arith.constant 0 : i32
    return %c0_i32, %c0_i32_0 : i32, i32
  }
  func.func @transform_3(%arg0: i32) -> (i32, i32) {
    %c0_i32 = arith.constant 0 : i32
    %c0_i32_0 = arith.constant 0 : i32
    %c0_i32_1 = arith.constant 0 : i32
    return %c0_i32, %c0_i32_0 : i32, i32
  }
  func.func @transform_4(%arg0: i32) -> (i32, i32) {
    %c0_i32 = arith.constant 0 : i32
    %c0_i32_0 = arith.constant 0 : i32
    %c0_i32_1 = arith.constant 0 : i32
    return %c0_i32, %c0_i32_0 : i32, i32
  }
  func.func @transform_5(%arg0: i32) -> (i32, i32) {
    %c0_i32 = arith.constant 0 : i32
    %c0_i32_0 = arith.constant 0 : i32
    %c0_i32_1 = arith.constant 0 : i32
    return %c0_i32, %c0_i32_0 : i32, i32
  }
  func.func @transform_6(%arg0: i32) -> (i32, i32) {
    %c0_i32 = arith.constant 0 : i32
    %c0_i32_0 = arith.constant 0 : i32
    %c0_i32_1 = arith.constant 0 : i32
    return %c0_i32, %c0_i32_0 : i32, i32
  }
  func.func @transform_7(%arg0: i32) -> (i32, i32) {
    %c0_i32 = arith.constant 0 : i32
    %c0_i32_0 = arith.constant 0 : i32
    return %c0_i32, %arg0 : i32, i32
  }
}

</mosaic_0001>

<bundles_post_ra>
// kernel: tpu_custom_call.1
= control target key start
LH: loop header
LB: loop body
LE: loop exit
PB: predicated region body
PF: predicated region fallthrough
CT: control target
= control target key end

     0   :  { %vm49_vm0 = vcmask 1044480   ;;  %vm42_vm1 = vcmask 39936   ;;  %v411_v4 = vmov 0   ;;  %s506_s0 = inlined_call_operand.vmem [shape: f32[5,128], index: 0, kind: input, shape index: {}]   ;;  %s507_s1 = inlined_call_operand.vmem [shape: f32[10,5], index: 1, kind: input, shape index: {}]   ;;  %s508_s2 = inlined_call_operand.vmem [shape: f32[10,1], index: 2, kind: input, shape index: {}]   ;;  %s509_s3 = inlined_call_operand.vmem [shape: f32[12,10], index: 3, kind: input, shape index: {}]   ;;  %s510_s4 = inlined_call_operand.vmem [shape: f32[12,1], index: 4, kind: input, shape index: {}]   ;;  %s511_s5 = inlined_call_operand.vmem [shape: f32[4,12], index: 5, kind: input, shape index: {}]   ;;  %s512_s6 = inlined_call_operand.vmem [shape: f32[4,1], index: 6, kind: input, shape index: {}]   ;;  %s513_s7 = inlined_call_operand.hbm [shape: f32[4,128], index: 7, kind: output, shape index: {}]  }
   0x1   :  { %v27_v0 = vld [vmem:[%s506_s0] sm:$0x1f]  ;;  %v29_v2 = vld [vmem:[%s507_s1 + $0x8] sm:$0x3]  ;;  %385 = vset.pattern.permute.xlu0 %v411_v4 }
   0x2   :  { %v28_v1 = vld [vmem:[%s507_s1] sm:$0xff]  ;;  %350 = vmatprep.subr.msk.mxu0 %vm49_vm0, %v27_v0 }
   0x3   :  { %352 = vmatprep.mubr.msk.f32.mxu0 %vm42_vm1, %v28_v1  ;;  %v30_v3 = vld [vmem:[%s508_s2] sm:$0xff]  ;;  %351 = vmatpush3.msk.msra.mxu0 %vm49_vm0, %v27_v0 }
   0x4   :  { %12 = vsyncpa [#allocation3], 0  ;;  %353 = vmatmul.mubr.msk.f32.vlgmr.msra.gmra.mrb[0].mxu0 %vm42_vm1, %v29_v2  ;;  %34 = vperm.xlu0 %385, %v30_v3   ;;  %v31_v5 = vld [vmem:[%s508_s2 + $0x8] sm:$0x3]  ;;  %v233_v6 = vld [vmem:[%s512_s6] sm:$0xf] }
   0x5   :  { %386 = vset.pattern.permute.xlu1 %v411_v4  ;;  %v130_v7 = vld [vmem:[%s509_s3] sm:$0xff]  ;;  %vm144_vm2 = vcmask 80896   ;;  %v133_v9 = vld [vmem:[%s510_s4 + $0x8] sm:$0xf]  ;;  %vm151_vm3 = vcmask 1041408   ;;  %vm412_vm4 = vmmov 1  }
   0x6   :  { %359 = vmatprep.mubr.msk.f32.mxu1 %vm144_vm2, %v130_v7  ;;  %v132_v8 = vld [vmem:[%s510_s4] sm:$0xff]  ;;  %vm370_vm5 = vmpackc.low %vm151_vm3, %vm412_vm4  ;;  %v131_v19 = vld [vmem:[%s509_s3 + $0x8] sm:$0xf]  ;;  %v413_v20 = vmov 0.0|0.0   ;;  %vm414_vm6 = vmmov 0   ;;  %v415_v21 = vmov 0.0  }
   0x7   :  { %136 = vperm.xlu1 %386, %v132_v8   ;;  %375 = vmatprep.subr.bf16.mxu0 %v413_v20  ;;  %vm243_vm7 = vcmask 1043456   ;;  %v232_v31 = vld [vmem:[%s511_s5] sm:$0xf]  ;;  %vm239_vm9 = vcmask 97280   ;;  %s416_s17 = smov [#allocation2]  }
   0x8   :  { %39 = vperm.xlu0 %385, %v31_v5   ;;  %366 = vmatprep.mubr.msk.f32.mxu0 %vm414_vm6, %v415_v21  ;;  %vm377_vm8 = vmpackc.low %vm243_vm7, %vm412_vm4  ;;  %s324_s18 = sshll.u32 %s416_s17, 4  ;;  %s325_s18 = int_to_ptr.vmem [resolvable:$true] %s324_s18 }
   0x9   :  { %s387_s19 = scalar_lea.vmem %s325_s18, 64  ;;  %p392_p1 = scmp.lt.s32.totalorder %s325_s18, %s325_s18 }
   0xa   :  { %p388_p0 = scmp.ne.s32.totalorder %s325_s18, %s387_s19  ;;  %p393_p2 = scmp.lt.s32.totalorder %s387_s19, %s387_s19 }
   0xb   :  { %141 = vperm.xlu1 %386, %v133_v9  }
   0xc   :  { %236 = vperm.xlu0 %385, %v233_v6   ;;  %p394_p3 = por %p393_p2, %p392_p1 }
   0xe   :  { %p395_p4 = pnand %p394_p3, %p388_p0 }
  0x83   :  { %v35_v10 = vpop.permute.xlu0 %34 }
  0x86   :  { %v137_v22 = vpop.permute.xlu1 %136 }
  0x87   :  { %v40_v11 = vpop.permute.xlu0 %39 }
  0x8a   :  { %v142_v23 = vpop.permute.xlu1 %141 }
  0x8b   :  { %v237_v32 = vpop.permute.xlu0 %236 }
  0xd7   :  { %v354_v12 = vpop.f32.mrb[0].mxu0 }
  0xd8   :  { %v125_v13 = vadd.f32 %v354_v12, %v40_v11  ;;  %v119_v14 = vpop.f32.mrb[1].mxu0 }
  0xd9   :  { %v120_v15 = vadd.f32 %v119_v14, %v35_v10 }
  0xda   :  { %v129_v16 = vmax.f32 %v125_v13, 0.0 }
  0xdb   :  { %v128_v17 = vmax.f32 %v120_v15, 0.0 }
  0xdd   :  { %v369_v18 = vpack.c.bf16 %v129_v16, %v128_v17 }
  0xdf   :  { %371 = vmatprep.subr.msk.bf16.mxu1 %vm370_vm5, %v369_v18 }
  0xe0   :  { %374 = vmatpush3.bf16.msk.msra.mxu1 %vm370_vm5, %v369_v18 }
  0xe3   :  { %360 = vmatmul.mubr.msk.f32.vlgmr.msra.gmra.mrb[0].mxu1 %vm144_vm2, %v131_v19 }
 0x1b6   :  { %v361_v24 = vpop.f32.mrb[0].mxu1 }
 0x1b7   :  { %v227_v25 = vadd.f32 %v361_v24, %v142_v23  ;;  %v221_v26 = vpop.f32.mrb[1].mxu1 }
 0x1b8   :  { %v222_v27 = vadd.f32 %v221_v26, %v137_v22 }
 0x1b9   :  { %v231_v28 = vmax.f32 %v227_v25, 0.0 }
 0x1ba   :  { %v230_v29 = vmax.f32 %v222_v27, 0.0 }
 0x1bc   :  { %v376_v30 = vpack.c.bf16 %v231_v28, %v230_v29 }
 0x1be   :  { %378 = vmatpush3.bf16.msk.msra.mxu0 %vm377_vm8, %v376_v30 }
 0x1c1   :  { %367 = vmatmul.mubr.msk.f32.vlgmr.msra.gmra.mrb[2].mxu0 %vm239_vm9, %v232_v31 }
 0x294   :  { %v313_v33 = vpop.f32.mrb[2].mxu0 }
 0x295   :  { %v314_v34 = vadd.f32 %v313_v33, %v237_v32  ;;  %v368_v35 = vpop.f32.mrb[3].mxu0 }
 0x297   :  { %317 = vst [vmem:[#allocation2] sm:$0xf] %v314_v34 }
 0x298   :  { %398 = shalt.err (!%p395_p4)
}
 0x299   :  { %s399_s5 = scalar_lea.hbm %s513_s7, 64 }
 0x29a   :  { %p400_p5 = scmp.ne.s32.totalorder %s513_s7, %s399_s5  ;;  %p403_p6 = scmp.lt.u32.totalorder %s399_s5, %s513_s7 }
 0x29c   :  { %p405_p7 = pnand %p403_p6, %p400_p5 }
 0x29e   :  { %408 = shalt.err (!%p405_p7)
}
 0x29f   :  { %327 = dma.vmem_to_hbm [thread:$0]  %s325_s18, 64, %s513_s7, [#allocation3]  }
 0x2a0   :  { %409 = dma.done.wait [#allocation3], 64  }
 0x2a1   :  { %410 = vsyncadd [#allocation3], 4294967232 }
 0x2a2   :  { %331 = vsyncpa [#allocation3], 1 }

</bundles_post_ra>
